<compile_context>
chip_gen: v7x
topology: tpu7x:2x2x1
jax: 0.10.0
libtpu: 0.0.40
codegen_flags: <defaults>
</compile_context>

<pallas_src>
import jax
import jax.numpy as jnp
from jax.experimental import pallas as pl
from jax.experimental.pallas import tpu as pltpu


def _round_up(n: int, m: int) -> int:
    return ((n + m - 1) // m) * m


def _cdiv(a: int, b: int) -> int:
    return -(-a // b)


def _vmem_capacity_bytes() -> int:
    try:
        return int(pltpu.get_tpu_info().vmem_capacity_bytes)
    except Exception:
        return 64 << 20  # conservative: v7x per-TensorCore VMEM


# ----------------------------- kernels --------------------------------------


def resblock_kernel(x_ref, w_ref, b_ref, o_ref):
    # Weights VMEM-resident path.
    # x_ref: [TB, Dp] activations (input dtype)
    # w_ref: [L, Dp, Dp] weights in (in, out) layout, compute dtype
    # b_ref: [L, 1, Dp]  biases, compute dtype
    # o_ref: [TB, Dp]
    compute_dtype = w_ref.dtype
    h = x_ref[...].astype(compute_dtype)          # MXU input dtype == param dtype
    num_layers = w_ref.shape[0]
    acc = None
    for i in range(num_layers):                   # static unroll (small L)
        acc = jnp.dot(h, w_ref[i], preferred_element_type=jnp.float32)
        acc = acc + b_ref[i].astype(jnp.float32)  # [1, Dp] broadcasts over rows
        if i != num_layers - 1:
            h = jnp.maximum(acc, 0.0).astype(compute_dtype)   # inter-layer ReLU
        # TODO(synk): nn.Dropout is identity in eval mode; training-mode
        # stochastic masking is intentionally not applied here.
    # Residual re-reads x_ref (tile is already in VMEM) so no f32 copy stays
    # live across the layer loop.  Padded lanes are exactly 0 on both operands.
    o_ref[...] = jnp.maximum(acc + x_ref[...].astype(jnp.float32), 0.0).astype(o_ref.dtype)


def resblock_kernel_hbm(x_ref, b_ref, w_hbm, o_ref, wbuf, sem):
    # Fallback for large layer_dim: weights stay in HBM; per-layer [Dp, Dp]
    # weight DMAs are double-buffered and hidden behind the previous matmul.
    compute_dtype = wbuf.dtype
    num_layers = b_ref.shape[0]

    def start_fetch(layer, slot):
        pltpu.make_async_copy(w_hbm.at[layer], wbuf.at[slot], sem.at[slot]).start()

    start_fetch(0, 0)
    h = x_ref[...].astype(compute_dtype)
    acc = None
    for i in range(num_layers):                   # static unroll (small L)
        slot = i & 1
        pltpu.make_async_copy(w_hbm.at[i], wbuf.at[slot], sem.at[slot]).wait()
        if i + 1 < num_layers:
            start_fetch(i + 1, 1 - slot)          # prefetch next layer's weights
        acc = jnp.dot(h, wbuf[slot], preferred_element_type=jnp.float32)
        acc = acc + b_ref[i].astype(jnp.float32)
        if i != num_layers - 1:
            h = jnp.maximum(acc, 0.0).astype(compute_dtype)
    o_ref[...] = jnp.maximum(acc + x_ref[...].astype(jnp.float32), 0.0).astype(o_ref.dtype)


# ----------------------------- wrapper ---------------------------------------


def prepare_resblock_params(weights, biases, *, param_dtype=None):
    """One-time parameter packing (call at load time, NOT per forward).

    weights: [L, D, D] in PyTorch (out, in) layout; biases: [L, D].
    Returns (w_packed [L, Dp, Dp] in (in, out) layout, b_packed [L, 1, Dp], D)
    with Dp = round_up(D, 128), zero-padded.  Pass param_dtype=jnp.bfloat16 for
    bf16 MXU throughput (f32 accumulation is kept inside the kernel).
    """
    L, D, _ = weights.shape
    Dp = _round_up(D, 128)
    if param_dtype is None:
        param_dtype = weights.dtype
    w_t = jnp.transpose(weights, (0, 2, 1)).astype(param_dtype)   # (in, out)
    w_p = jnp.pad(w_t, ((0, 0), (0, Dp - D), (0, Dp - D)))
    b_p = jnp.pad(biases.astype(param_dtype), ((0, 0), (0, Dp - D)))[:, None, :]
    return w_p, b_p, D


def resblock_forward(x, w_packed, b_packed, feat_dim, *, batch_tile=512,
                     force_hbm_weights=False):
    """x: [B, D]. w_packed/b_packed from prepare_resblock_params."""
    B, D = x.shape
    assert D == feat_dim
    L, Dp, _ = w_packed.shape

    # Balanced batch tiling: rows padded to a multiple of 8 (sublanes); tiles
    # chosen so the last tile is not mostly zero padding.
    Bp8 = _round_up(max(B, 8), 8)
    n_tiles = _cdiv(Bp8, batch_tile)
    TB = _round_up(_cdiv(Bp8, n_tiles), 8)
    Bp = n_tiles * TB
    x_p = jnp.pad(x, ((0, Bp - B), (0, Dp - D)))

    # VMEM budget, clamped to the chip's physical capacity minus headroom.
    x_it = jnp.dtype(x.dtype).itemsize
    w_it = jnp.dtype(w_packed.dtype).itemsize
    x_tile_bytes = TB * Dp * x_it
    w_bytes = L * Dp * Dp * w_it
    b_bytes = L * Dp * w_it
    interm_bytes = 4 * TB * Dp * 4          # h / acc / residual working set (f32)
    margin = 8 << 20
    budget = max(_vmem_capacity_bytes() - (16 << 20), 32 << 20)

    need_resident = 4 * x_tile_bytes + w_bytes + b_bytes + interm_bytes + margin
    weights_resident = (not force_hbm_weights) and (need_resident <= budget)

    cost = pl.CostEstimate(
        flops=2 * L * Bp * Dp * Dp,
        bytes_accessed=(2 * Bp * Dp * x_it
                        + L * Dp * Dp * w_it * (1 if weights_resident else n_tiles)
                        + L * Dp * w_it),
        transcendentals=0)

    grid = (Bp // TB,)
    xo_spec = pl.BlockSpec((TB, Dp), lambda i: (i, 0))
    out_shape = jax.ShapeDtypeStruct((Bp, Dp), x.dtype)

    if weights_resident:
        # Allow room for the conservative (double-buffered) retry, still capped
        # below physical VMEM.
        vmem_limit = int(min(max(need_resident + w_bytes, 32 << 20), budget))

        def _call(single_buffer_params):
            extra = ({"pipeline_mode": pl.Buffered(1)} if single_buffer_params else {})
            return pl.pallas_call(
                resblock_kernel,
                out_shape=out_shape,
                grid=grid,
                in_specs=[
                    xo_spec,                                               # batch-tiled x
                    pl.BlockSpec((L, Dp, Dp), lambda i: (0, 0, 0), **extra),  # resident W
                    pl.BlockSpec((L, 1, Dp), lambda i: (0, 0, 0), **extra),   # resident b
                ],
                out_specs=xo_spec,
                compiler_params=pltpu.CompilerParams(
                    dimension_semantics=("parallel",),
                    vmem_limit_bytes=vmem_limit),
                cost_estimate=cost,
            )(x_p, w_packed, b_packed)

        try:
            out_p = _call(True)       # single-buffered invariant operands
        except Exception:
            out_p = _call(False)      # conservative fallback: default buffering
    else:
        need_hbm = (4 * x_tile_bytes + 2 * Dp * Dp * w_it + 2 * b_bytes
                    + interm_bytes + margin)
        vmem_limit = int(min(max(need_hbm, 32 << 20), budget))
        out_p = pl.pallas_call(
            resblock_kernel_hbm,
            out_shape=out_shape,
            grid=grid,
            in_specs=[
                xo_spec,                                         # batch-tiled x
                pl.BlockSpec((L, 1, Dp), lambda i: (0, 0, 0)),   # resident biases
                pl.BlockSpec(memory_space=pl.ANY),               # weights stay in HBM
            ],
            out_specs=xo_spec,
            scratch_shapes=[
                pltpu.VMEM((2, Dp, Dp), w_packed.dtype),         # double-buffered layer W
                pltpu.SemaphoreType.DMA((2,)),
            ],
            compiler_params=pltpu.CompilerParams(
                dimension_semantics=("arbitrary",),
                vmem_limit_bytes=vmem_limit),
            cost_estimate=cost,
        )(x_p, b_packed, w_packed)

    return out_p[:B, :D]


# ----------------------------- reference & tests -----------------------------


def resblock_reference(x, weights, biases):
    h = x
    L = weights.shape[0]
    for i in range(L):
        h = h @ weights[i].T + biases[i]
        if i != L - 1:
            h = jnp.maximum(h, 0.0)
    return jnp.maximum(h + x, 0.0)


if __name__ == "__main__":
    key = jax.random.PRNGKey(0)
    kx, kw, kb, kx2, kw2, kb2 = jax.random.split(key, 6)

    # --- 1) Small shapes implied by the module (f32 params, tight tolerance) ---
    batch, layer_dim, num_layers = 8, 32, 2
    x = jax.random.normal(kx, (batch, layer_dim), dtype=jnp.float32)
    weights = 0.02 * jax.random.normal(
        kw, (num_layers, layer_dim, layer_dim), dtype=jnp.float32)
    biases = 0.01 * jax.random.normal(
        kb, (num_layers, layer_dim), dtype=jnp.float32)

    w_packed, b_packed, D = prepare_resblock_params(weights, biases)
    out = jax.block_until_ready(resblock_forward(x, w_packed, b_packed, D))
    ref = resblock_reference(x, weights, biases)
    assert out.shape == ref.shape
    assert jnp.allclose(out, ref, atol=2e-5, rtol=2e-5), "mismatch vs reference (f32 small)"

    # --- 2) Non-aligned batch/feature, bf16 params (MXU path), loose tolerance ---
    batch2, layer_dim2, num_layers2 = 200, 96, 3
    x2 = jax.random.normal(kx2, (batch2, layer_dim2), dtype=jnp.float32)
    weights2 = 0.05 * jax.random.normal(
        kw2, (num_layers2, layer_dim2, layer_dim2), dtype=jnp.float32)
    biases2 = 0.01 * jax.random.normal(
        kb2, (num_layers2, layer_dim2), dtype=jnp.float32)

    w_packed2, b_packed2, D2 = prepare_resblock_params(
        weights2, biases2, param_dtype=jnp.bfloat16)
    out2 = jax.block_until_ready(resblock_forward(x2, w_packed2, b_packed2, D2))
    ref2 = resblock_reference(x2, weights2, biases2)
    assert out2.shape == ref2.shape
    assert jnp.allclose(out2, ref2, atol=5e-2, rtol=5e-2), "mismatch vs reference (bf16 tiled)"

    # --- 3) Forced HBM-weights fallback path (manual double-buffered DMA) ---
    out3 = jax.block_until_ready(
        resblock_forward(x, w_packed, b_packed, D, force_hbm_weights=True))
    assert jnp.allclose(out3, ref, atol=2e-5, rtol=2e-5), "mismatch vs reference (HBM fallback)"

    print("KERNEL_OK")
</pallas_src>

<mosaic_0001>
module attributes {stable_mosaic.version = 11 : i64} {
  func.func @resblock_kernel(%arg0: i32, %arg1: memref<8x128xf32, #tpu.memory_space<vmem>>, %arg2: memref<2x128x128xf32, #tpu.memory_space<vmem>>, %arg3: memref<2x1x128xf32, #tpu.memory_space<vmem>>, %arg4: memref<8x128xf32, #tpu.memory_space<vmem>>) attributes {dimension_semantics = [#tpu.dimension_semantics<parallel>], iteration_bounds = array<i64: 1>, scalar_prefetch = 0 : i64, scratch_operands = 0 : i64, tpu.core_type = #tpu.core_type<tc>, window_params = [{transform_indices = @transform_0, window_bounds = array<i64: 8, 128>}, {pipeline_mode = #tpu.pipeline_mode<synchronous>, transform_indices = @transform_1, window_bounds = array<i64: 2, 128, 128>}, {pipeline_mode = #tpu.pipeline_mode<synchronous>, transform_indices = @transform_2, window_bounds = array<i64: 2, 1, 128>}, {transform_indices = @transform_3, window_bounds = array<i64: 8, 128>}]} {
    %c0 = arith.constant 0 : index
    %c0_0 = arith.constant 0 : index
    %0 = vector.load %arg1[%c0, %c0_0] : memref<8x128xf32, #tpu.memory_space<vmem>>, vector<8x128xf32>
    %c0_1 = arith.constant 0 : index
    %c0_2 = arith.constant 0 : index
    %c0_3 = arith.constant 0 : index
    %1 = vector.load %arg2[%c0_1, %c0_2, %c0_3] : memref<2x128x128xf32, #tpu.memory_space<vmem>>, vector<1x128x128xf32>
    %2 = vector.shape_cast %1 : vector<1x128x128xf32> to vector<128x128xf32>
    %cst = arith.constant dense<0.000000e+00> : vector<8x128xf32>
    %3 = tpu.matmul %0, %2, %cst {dimension_numbers = #tpu.dot_dimension_numbers<[1], [0], [0], [1], [0, 0, 1, 1], [], []>} : vector<8x128xf32>, vector<128x128xf32>, vector<8x128xf32> -> vector<8x128xf32>
    %c0_4 = arith.constant 0 : index
    %c0_5 = arith.constant 0 : index
    %c0_6 = arith.constant 0 : index
    %4 = vector.load %arg3[%c0_4, %c0_5, %c0_6] : memref<2x1x128xf32, #tpu.memory_space<vmem>>, vector<1x1x128xf32>
    %5 = vector.shape_cast %4 : vector<1x1x128xf32> to vector<1x128xf32>
    %6 = vector.broadcast %5 : vector<1x128xf32> to vector<8x128xf32>
    %7 = arith.addf %3, %6 : vector<8x128xf32>
    %cst_7 = arith.constant 0.000000e+00 : f32
    %8 = vector.broadcast %cst_7 : f32 to vector<8x128xf32>
    %9 = arith.maximumf %7, %8 : vector<8x128xf32>
    %c1 = arith.constant 1 : index
    %c0_8 = arith.constant 0 : index
    %c0_9 = arith.constant 0 : index
    %10 = vector.load %arg2[%c1, %c0_8, %c0_9] : memref<2x128x128xf32, #tpu.memory_space<vmem>>, vector<1x128x128xf32>
    %11 = vector.shape_cast %10 : vector<1x128x128xf32> to vector<128x128xf32>
    %cst_10 = arith.constant dense<0.000000e+00> : vector<8x128xf32>
    %12 = tpu.matmul %9, %11, %cst_10 {dimension_numbers = #tpu.dot_dimension_numbers<[1], [0], [0], [1], [0, 0, 1, 1], [], []>} : vector<8x128xf32>, vector<128x128xf32>, vector<8x128xf32> -> vector<8x128xf32>
    %c1_11 = arith.constant 1 : index
    %c0_12 = arith.constant 0 : index
    %c0_13 = arith.constant 0 : index
    %13 = vector.load %arg3[%c1_11, %c0_12, %c0_13] : memref<2x1x128xf32, #tpu.memory_space<vmem>>, vector<1x1x128xf32>
    %14 = vector.shape_cast %13 : vector<1x1x128xf32> to vector<1x128xf32>
    %15 = vector.broadcast %14 : vector<1x128xf32> to vector<8x128xf32>
    %16 = arith.addf %12, %15 : vector<8x128xf32>
    %c0_14 = arith.constant 0 : index
    %c0_15 = arith.constant 0 : index
    %17 = vector.load %arg1[%c0_14, %c0_15] : memref<8x128xf32, #tpu.memory_space<vmem>>, vector<8x128xf32>
    %18 = arith.addf %16, %17 : vector<8x128xf32>
    %cst_16 = arith.constant 0.000000e+00 : f32
    %19 = vector.broadcast %cst_16 : f32 to vector<8x128xf32>
    %20 = arith.maximumf %18, %19 : vector<8x128xf32>
    %c0_17 = arith.constant 0 : index
    %c0_18 = arith.constant 0 : index
    %21 = vector.load %arg4[%c0_17, %c0_18] : memref<8x128xf32, #tpu.memory_space<vmem>>, vector<8x128xf32>
    tpu.vector_store %arg4[%c0_17, %c0_18], %20 {strides = array<i32>} : memref<8x128xf32, #tpu.memory_space<vmem>>, vector<8x128xf32>,
    return
  }
  func.func @transform_0(%arg0: i32) -> (i32, i32) {
    %c0_i32 = arith.constant 0 : i32
    %c0_i32_0 = arith.constant 0 : i32
    return %arg0, %c0_i32 : i32, i32
  }
  func.func @transform_1(%arg0: i32) -> (i32, i32, i32) {
    %c0_i32 = arith.constant 0 : i32
    %c0_i32_0 = arith.constant 0 : i32
    %c0_i32_1 = arith.constant 0 : i32
    %c0_i32_2 = arith.constant 0 : i32
    return %c0_i32, %c0_i32_0, %c0_i32_1 : i32, i32, i32
  }
  func.func @transform_2(%arg0: i32) -> (i32, i32, i32) {
    %c0_i32 = arith.constant 0 : i32
    %c0_i32_0 = arith.constant 0 : i32
    %c0_i32_1 = arith.constant 0 : i32
    %c0_i32_2 = arith.constant 0 : i32
    return %c0_i32, %c0_i32_0, %c0_i32_1 : i32, i32, i32
  }
  func.func @transform_3(%arg0: i32) -> (i32, i32) {
    %c0_i32 = arith.constant 0 : i32
    %c0_i32_0 = arith.constant 0 : i32
    return %arg0, %c0_i32 : i32, i32
  }
}

module attributes {stable_mosaic.version = 11 : i64} {
  func.func @resblock_kernel(%arg0: i32, %arg1: memref<8x128xf32, #tpu.memory_space<vmem>>, %arg2: memref<2x128x128xf32, #tpu.memory_space<vmem>>, %arg3: memref<2x1x128xf32, #tpu.memory_space<vmem>>, %arg4: memref<8x128xf32, #tpu.memory_space<vmem>>) attributes {dimension_semantics = [#tpu.dimension_semantics<parallel>], iteration_bounds = array<i64: 1>, scalar_prefetch = 0 : i64, scratch_operands = 0 : i64, tpu.core_type = #tpu.core_type<tc>, window_params = [{transform_indices = @transform_0, window_bounds = array<i64: 8, 128>}, {pipeline_mode = #tpu.pipeline_mode<synchronous>, transform_indices = @transform_1, window_bounds = array<i64: 2, 128, 128>}, {pipeline_mode = #tpu.pipeline_mode<synchronous>, transform_indices = @transform_2, window_bounds = array<i64: 2, 1, 128>}, {transform_indices = @transform_3, window_bounds = array<i64: 8, 128>}]} {
    %c0 = arith.constant 0 : index
    %c0_0 = arith.constant 0 : index
    %0 = vector.load %arg1[%c0, %c0_0] : memref<8x128xf32, #tpu.memory_space<vmem>>, vector<8x128xf32>
    %c0_1 = arith.constant 0 : index
    %c0_2 = arith.constant 0 : index
    %c0_3 = arith.constant 0 : index
    %1 = vector.load %arg2[%c0_1, %c0_2, %c0_3] : memref<2x128x128xf32, #tpu.memory_space<vmem>>, vector<1x128x128xf32>
    %2 = vector.shape_cast %1 : vector<1x128x128xf32> to vector<128x128xf32>
    %cst = arith.constant dense<0.000000e+00> : vector<8x128xf32>
    %3 = tpu.matmul %0, %2, %cst {dimension_numbers = #tpu.dot_dimension_numbers<[1], [0], [0], [1], [0, 0, 1, 1], [], []>} : vector<8x128xf32>, vector<128x128xf32>, vector<8x128xf32> -> vector<8x128xf32>
    %c0_4 = arith.constant 0 : index
    %c0_5 = arith.constant 0 : index
    %c0_6 = arith.constant 0 : index
    %4 = vector.load %arg3[%c0_4, %c0_5, %c0_6] : memref<2x1x128xf32, #tpu.memory_space<vmem>>, vector<1x1x128xf32>
    %5 = vector.shape_cast %4 : vector<1x1x128xf32> to vector<1x128xf32>
    %6 = vector.broadcast %5 : vector<1x128xf32> to vector<8x128xf32>
    %7 = arith.addf %3, %6 : vector<8x128xf32>
    %cst_7 = arith.constant 0.000000e+00 : f32
    %8 = vector.broadcast %cst_7 : f32 to vector<8x128xf32>
    %9 = arith.maximumf %7, %8 : vector<8x128xf32>
    %c1 = arith.constant 1 : index
    %c0_8 = arith.constant 0 : index
    %c0_9 = arith.constant 0 : index
    %10 = vector.load %arg2[%c1, %c0_8, %c0_9] : memref<2x128x128xf32, #tpu.memory_space<vmem>>, vector<1x128x128xf32>
    %11 = vector.shape_cast %10 : vector<1x128x128xf32> to vector<128x128xf32>
    %cst_10 = arith.constant dense<0.000000e+00> : vector<8x128xf32>
    %12 = tpu.matmul %9, %11, %cst_10 {dimension_numbers = #tpu.dot_dimension_numbers<[1], [0], [0], [1], [0, 0, 1, 1], [], []>} : vector<8x128xf32>, vector<128x128xf32>, vector<8x128xf32> -> vector<8x128xf32>
    %c1_11 = arith.constant 1 : index
    %c0_12 = arith.constant 0 : index
    %c0_13 = arith.constant 0 : index
    %13 = vector.load %arg3[%c1_11, %c0_12, %c0_13] : memref<2x1x128xf32, #tpu.memory_space<vmem>>, vector<1x1x128xf32>
    %14 = vector.shape_cast %13 : vector<1x1x128xf32> to vector<1x128xf32>
    %15 = vector.broadcast %14 : vector<1x128xf32> to vector<8x128xf32>
    %16 = arith.addf %12, %15 : vector<8x128xf32>
    %c0_14 = arith.constant 0 : index
    %c0_15 = arith.constant 0 : index
    %17 = vector.load %arg1[%c0_14, %c0_15] : memref<8x128xf32, #tpu.memory_space<vmem>>, vector<8x128xf32>
    %18 = arith.addf %16, %17 : vector<8x128xf32>
    %cst_16 = arith.constant 0.000000e+00 : f32
    %19 = vector.broadcast %cst_16 : f32 to vector<8x128xf32>
    %20 = arith.maximumf %18, %19 : vector<8x128xf32>
    %c0_17 = arith.constant 0 : index
    %c0_18 = arith.constant 0 : index
    %21 = vector.load %arg4[%c0_17, %c0_18] : memref<8x128xf32, #tpu.memory_space<vmem>>, vector<8x128xf32>
    tpu.vector_store %arg4[%c0_17, %c0_18], %20 {strides = array<i32>} : memref<8x128xf32, #tpu.memory_space<vmem>>, vector<8x128xf32>,
    return
  }
  func.func @transform_0(%arg0: i32) -> (i32, i32) {
    %c0_i32 = arith.constant 0 : i32
    %c0_i32_0 = arith.constant 0 : i32
    return %arg0, %c0_i32 : i32, i32
  }
  func.func @transform_1(%arg0: i32) -> (i32, i32, i32) {
    %c0_i32 = arith.constant 0 : i32
    %c0_i32_0 = arith.constant 0 : i32
    %c0_i32_1 = arith.constant 0 : i32
    %c0_i32_2 = arith.constant 0 : i32
    return %c0_i32, %c0_i32_0, %c0_i32_1 : i32, i32, i32
  }
  func.func @transform_2(%arg0: i32) -> (i32, i32, i32) {
    %c0_i32 = arith.constant 0 : i32
    %c0_i32_0 = arith.constant 0 : i32
    %c0_i32_1 = arith.constant 0 : i32
    %c0_i32_2 = arith.constant 0 : i32
    return %c0_i32, %c0_i32_0, %c0_i32_1 : i32, i32, i32
  }
  func.func @transform_3(%arg0: i32) -> (i32, i32) {
    %c0_i32 = arith.constant 0 : i32
    %c0_i32_0 = arith.constant 0 : i32
    return %arg0, %c0_i32 : i32, i32
  }
}

</mosaic_0001>

<bundles_post_ra>
// kernel: tpu_custom_call.1
= control target key start
LH: loop header
LB: loop body
LE: loop exit
PB: predicated region body
PF: predicated region fallthrough
CT: control target
= control target key end

     0   :  { %8 = vsyncpa [#allocation3], 0  ;;  %s578_s0 = inlined_call_operand.hbm [shape: f32[8,128], index: 0, kind: input, shape index: {}]   ;;  %s579_s1 = inlined_call_operand.hbm [shape: f32[2,128,128], index: 1, kind: input, shape index: {}]   ;;  %s580_s2 = inlined_call_operand.vmem [shape: f32[2,1,128], index: 2, kind: input, shape index: {}]   ;;  %s581_s3 = inlined_call_operand.hbm [shape: f32[8,128], index: 3, kind: output, shape index: {}]  }
   0x1   :  { %9 = vsyncpa [#allocation6], 0 }
   0x2   :  { %10 = vsyncpa [#allocation4], 0  ;;  %s485_s12 = smov [#allocation2]   ;;  %s486_s14 = smov [#allocation5]  }
   0x3   :  { %s17_s13 = sshll.u32 %s485_s12, 4  ;;  %s26_s15 = sshll.u32 %s486_s14, 4  ;;  %s18_s13 = int_to_ptr.vmem [resolvable:$true] %s17_s13  ;;  %s513_s15 = int_to_ptr.vmem [resolvable:$true] %s26_s15 }
   0x4   :  { %s413_s18 = scalar_lea.hbm %s578_s0, 128 }
   0x5   :  { %p414_p0 = scmp.ne.s32.totalorder %s578_s0, %s413_s18  ;;  %p417_p1 = scmp.lt.u32.totalorder %s413_s18, %s578_s0 }
   0x7   :  { %p419_p2 = pnand %p417_p1, %p414_p0 }
   0x9   :  { %422 = shalt.err (!%p419_p2)
}
   0xa   :  { %s423_s23 = scalar_lea.vmem %s18_s13, 128  ;;  %p428_p4 = scmp.lt.s32.totalorder %s18_s13, %s18_s13 }
   0xb   :  { %p424_p3 = scmp.ne.s32.totalorder %s18_s13, %s423_s23  ;;  %p429_p5 = scmp.lt.s32.totalorder %s423_s23, %s423_s23 }
   0xd   :  { %p430_p6 = por %p429_p5, %p428_p4 }
   0xf   :  { %p431_p7 = pnand %p430_p6, %p424_p3 }
  0x11   :  { %434 = shalt.err (!%p431_p7)
}
  0x12   :  { %20 = dma.hbm_to_vmem [thread:$0]  %s578_s0, 128, %s18_s13, [#allocation3]  }
  0x13   :  { %s435_s28 = scalar_lea.hbm %s579_s1, 4096 }
  0x14   :  { %p436_p8 = scmp.ne.s32.totalorder %s579_s1, %s435_s28  ;;  %p439_p9 = scmp.lt.u32.totalorder %s435_s28, %s579_s1 }
  0x16   :  { %p441_p10 = pnand %p439_p9, %p436_p8 }
  0x18   :  { %444 = shalt.err (!%p441_p10)
}
  0x19   :  { %s445_s6 = scalar_lea.vmem %s513_s15, 4096  ;;  %p450_p12 = scmp.lt.s32.totalorder %s513_s15, %s513_s15 }
  0x1a   :  { %p446_p11 = scmp.ne.s32.totalorder %s513_s15, %s445_s6  ;;  %p451_p13 = scmp.lt.s32.totalorder %s445_s6, %s445_s6 }
  0x1c   :  { %p452_p0 = por %p451_p13, %p450_p12 }
  0x1e   :  { %p453_p1 = pnand %p452_p0, %p446_p11 }
  0x20   :  { %456 = shalt.err (!%p453_p1)
}
  0x21   :  { %s487_s0 = smov 128   ;;  %s488_s7 = smov 8  }
  0x22   :  { %32 = dma.hbm_to_vmem [thread:$0]  %s579_s1, 4096, %s513_s15, [#allocation6], %s487_s0, %s487_s0, %s488_s7  }
  0x23   :  { %479 = dma.done.wait [#allocation3], 128  }
  0x24   :  { %480 = vsyncadd [#allocation3], 4294967168 }
  0x25   :  { %481 = dma.done.wait [#allocation6], 4096  }
  0x26   :  { %482 = vsyncadd [#allocation6], 4294963200  ;;  %v489_v0 = vmov 0.0|0.0   ;;  %vm490_vm0 = vmmov 0   ;;  %v491_v1 = vmov 0.0   ;;  %v42_v2 = vld [vmem:[#allocation5] sm:$0xff] }
  0x27   :  { %357 = vmatprep.subr.bf16.mxu0 %v489_v0  ;;  %319 = vmatprep.mubr.msk.f32.mxu0 %vm490_vm0, %v491_v1  ;;  %v43_v3 = vld [vmem:[#allocation5 + $0x8] sm:$0xff]  ;;  %v44_v4 = vld [vmem:[#allocation5 + $0x10] sm:$0xff]  ;;  %v45_v6 = vld [vmem:[#allocation5 + $0x18] sm:$0xff]  ;;  %s492_s13 = smov [#allocation7]  }
  0x28   :  { %381 = vmatprep.subr.bf16.mxu1 %v489_v0  ;;  %354 = vmatprep.mubr.msk.f32.mxu1 %vm490_vm0, %v491_v1  ;;  %v358_v5 = vpack.c.bf16 %v43_v3, %v42_v2  ;;  %v361_v7 = vpack.c.bf16 %v45_v6, %v44_v4  ;;  %v46_v8 = vld [vmem:[#allocation5 + $0x20] sm:$0xff]  ;;  %v47_v9 = vld [vmem:[#allocation5 + $0x28] sm:$0xff]  ;;  %v139_v12 = vld [vmem:[#allocation5 + $0x90] sm:$0xff]  ;;  %s240_s14 = sshll.u32 %s492_s13, 4  ;;  %s241_s14 = int_to_ptr.vmem [resolvable:$true] %s240_s14 }
  0x29   :  { %v137_v10 = vld [vmem:[#allocation5 + $0x80] sm:$0xff]  ;;  %v138_v11 = vld [vmem:[#allocation5 + $0x88] sm:$0xff]  ;;  %v140_v13 = vld [vmem:[#allocation5 + $0x98] sm:$0xff]  ;;  %v364_v14 = vpack.c.bf16 %v47_v9, %v46_v8  ;;  %s457_s15 = scalar_lea.vmem %s241_s14, 128  ;;  %p462_p3 = scmp.lt.s32.totalorder %s241_s14, %s241_s14 }
  0x2a   :  { %359 = vmatpush3.bf16.msra.mxu0 %v358_v5  ;;  %v382_v15 = vpack.c.bf16 %v138_v11, %v137_v10  ;;  %v48_v16 = vld [vmem:[#allocation5 + $0x30] sm:$0xff]  ;;  %v49_v17 = vld [vmem:[#allocation5 + $0x38] sm:$0xff]  ;;  %v385_v18 = vpack.c.bf16 %v140_v13, %v139_v12  ;;  %v141_v19 = vld [vmem:[#allocation5 + $0xa0] sm:$0xff]  ;;  %p458_p2 = scmp.ne.s32.totalorder %s241_s14, %s457_s15  ;;  %p463_p4 = scmp.lt.s32.totalorder %s457_s15, %s457_s15 }
  0x2b   :  { %360 = vmatprep.subr.bf16.mxu0 %v489_v0  ;;  %v142_v20 = vld [vmem:[#allocation5 + $0xa8] sm:$0xff]  ;;  %v367_v21 = vpack.c.bf16 %v49_v17, %v48_v16  ;;  %v50_v22 = vld [vmem:[#allocation5 + $0x40] sm:$0xff]  ;;  %v143_v25 = vld [vmem:[#allocation5 + $0xb0] sm:$0xff] }
  0x2c   :  { %383 = vmatpush3.bf16.msra.mxu1 %v382_v15  ;;  %v51_v23 = vld [vmem:[#allocation5 + $0x48] sm:$0xff]  ;;  %v388_v24 = vpack.c.bf16 %v142_v20, %v141_v19  ;;  %v144_v26 = vld [vmem:[#allocation5 + $0xb8] sm:$0xff]  ;;  %v52_v28 = vld [vmem:[#allocation5 + $0x50] sm:$0xff]  ;;  %p464_p5 = por %p463_p4, %p462_p3 }
  0x2d   :  { %384 = vmatprep.subr.bf16.mxu1 %v489_v0  ;;  %v370_v27 = vpack.c.bf16 %v51_v23, %v50_v22  ;;  %v53_v29 = vld [vmem:[#allocation5 + $0x58] sm:$0xff]  ;;  %v391_v30 = vpack.c.bf16 %v144_v26, %v143_v25  ;;  %v145_v31 = vld [vmem:[#allocation5 + $0xc0] sm:$0xff]  ;;  %v146_v32 = vld [vmem:[#allocation5 + $0xc8] sm:$0xff] }
  0x2e   :  { %362 = vmatpush3.bf16.msra.mxu0 %v361_v7  ;;  %v373_v33 = vpack.c.bf16 %v53_v29, %v52_v28  ;;  %v54_v34 = vld [vmem:[#allocation5 + $0x60] sm:$0xff]  ;;  %v55_v35 = vld [vmem:[#allocation5 + $0x68] sm:$0xff]  ;;  %v394_v36 = vpack.c.bf16 %v146_v32, %v145_v31  ;;  %v147_v37 = vld [vmem:[#allocation5 + $0xd0] sm:$0xff]  ;;  %p465_p6 = pnand %p464_p5, %p458_p2 }
  0x2f   :  { %363 = vmatprep.subr.bf16.mxu0 %v489_v0  ;;  %v148_v38 = vld [vmem:[#allocation5 + $0xd8] sm:$0xff]  ;;  %v376_v39 = vpack.c.bf16 %v55_v35, %v54_v34  ;;  %v56_v40 = vld [vmem:[#allocation5 + $0x70] sm:$0xff]  ;;  %v149_v43 = vld [vmem:[#allocation5 + $0xe0] sm:$0xff] }
  0x30   :  { %386 = vmatpush3.bf16.msra.mxu1 %v385_v18  ;;  %v57_v41 = vld [vmem:[#allocation5 + $0x78] sm:$0xff]  ;;  %v397_v42 = vpack.c.bf16 %v148_v38, %v147_v37  ;;  %v150_v44 = vld [vmem:[#allocation5 + $0xe8] sm:$0xff]  ;;  %v151_v48 = vld [vmem:[#allocation5 + $0xf0] sm:$0xff] }
  0x31   :  { %387 = vmatprep.subr.bf16.mxu1 %v489_v0  ;;  %v379_v45 = vpack.c.bf16 %v57_v41, %v56_v40  ;;  %v400_v46 = vpack.c.bf16 %v150_v44, %v149_v43  ;;  %v41_v47 = vld [vmem:[#allocation2] sm:$0xff] }
  0x32   :  { %365 = vmatpush3.bf16.msra.mxu0 %v364_v14  ;;  %v152_v49 = vld [vmem:[#allocation5 + $0xf8] sm:$0xff] }
  0x33   :  { %366 = vmatprep.subr.bf16.mxu0 %v489_v0  ;;  %v403_v50 = vpack.c.bf16 %v152_v49, %v151_v48  ;;  %v250_v51 = vld [vmem:[%s580_s2] ss:$0 sm:$0xff]  ;;  %v252_v56 = vld [vmem:[%s580_s2 + $0x1] ss:$0 sm:$0xff] }
  0x34   :  { %389 = vmatpush3.bf16.msra.mxu1 %v388_v24 }
  0x35   :  { %390 = vmatprep.subr.bf16.mxu1 %v489_v0 }
  0x36   :  { %368 = vmatpush3.bf16.msra.mxu0 %v367_v21 }
  0x37   :  { %369 = vmatprep.subr.bf16.mxu0 %v489_v0 }
  0x38   :  { %392 = vmatpush3.bf16.msra.mxu1 %v391_v30 }
  0x39   :  { %393 = vmatprep.subr.bf16.mxu1 %v489_v0 }
  0x3a   :  { %371 = vmatpush3.bf16.msra.mxu0 %v370_v27 }
  0x3b   :  { %372 = vmatprep.subr.bf16.mxu0 %v489_v0 }
  0x3c   :  { %395 = vmatpush3.bf16.msra.mxu1 %v394_v36 }
  0x3d   :  { %396 = vmatprep.subr.bf16.mxu1 %v489_v0 }
  0x3e   :  { %374 = vmatpush3.bf16.msra.mxu0 %v373_v33 }
  0x3f   :  { %375 = vmatprep.subr.bf16.mxu0 %v489_v0 }
  0x40   :  { %398 = vmatpush3.bf16.msra.mxu1 %v397_v42 }
  0x41   :  { %399 = vmatprep.subr.bf16.mxu1 %v489_v0 }
  0x42   :  { %377 = vmatpush3.bf16.msra.mxu0 %v376_v39 }
  0x43   :  { %378 = vmatprep.subr.bf16.mxu0 %v489_v0 }
  0x44   :  { %401 = vmatpush3.bf16.msra.mxu1 %v400_v46 }
  0x45   :  { %402 = vmatprep.subr.bf16.mxu1 %v489_v0 }
  0x46   :  { %380 = vmatpush3.bf16.msra.mxu0 %v379_v45 }
  0x48   :  { %404 = vmatpush3.bf16.msra.mxu1 %v403_v50 }
  0x49   :  { %320 = vmatmul.mubr.f32.vlgmr.msra.gmra.mrb[0].mxu0 %v41_v47 }
 0x11c   :  { %v131_v52 = vpop.f32.mrb[0].mxu0 }
 0x11d   :  { %v132_v53 = vadd.f32 %v250_v51, %v131_v52  ;;  %v321_v54 = vpop.f32.mrb[1].mxu0 }
 0x11f   :  { %v135_v55 = vmax.f32 %v132_v53, 0.0 }
 0x121   :  { %355 = vmatmul.mubr.f32.vlgmr.msra.gmra.mrb[0].mxu1 %v135_v55 }
 0x1f4   :  { %v227_v57 = vpop.f32.mrb[0].mxu1 }
 0x1f5   :  { %v228_v58 = vadd.f32 %v252_v56, %v227_v57  ;;  %v356_v59 = vpop.f32.mrb[1].mxu1 }
 0x1f7   :  { %v231_v60 = vadd.f32 %v228_v58, %v41_v47 }
 0x1f9   :  { %v232_v61 = vmax.f32 %v231_v60, 0.0 }
 0x1fb   :  { %233 = vst [vmem:[#allocation7] sm:$0xff] %v232_v61 }
 0x1fc   :  { %468 = shalt.err (!%p465_p6)
}
 0x1fd   :  { %s469_s2 = scalar_lea.hbm %s581_s3, 128 }
 0x1fe   :  { %p470_p7 = scmp.ne.s32.totalorder %s581_s3, %s469_s2  ;;  %p473_p8 = scmp.lt.u32.totalorder %s469_s2, %s581_s3 }
 0x200   :  { %p475_p9 = pnand %p473_p8, %p470_p7 }
 0x202   :  { %478 = shalt.err (!%p475_p9)
}
 0x203   :  { %243 = dma.vmem_to_hbm [thread:$0]  %s241_s14, 128, %s581_s3, [#allocation4]  }
 0x204   :  { %483 = dma.done.wait [#allocation4], 128  }
 0x205   :  { %484 = vsyncadd [#allocation4], 4294967168 }
 0x206   :  { %247 = vsyncpa [#allocation3], 1 }
 0x207   :  { %248 = vsyncpa [#allocation6], 1 }
 0x208   :  { %249 = vsyncpa [#allocation4], 1 }

// kernel: tpu_custom_call.1
= control target key start
LH: loop header
LB: loop body
LE: loop exit
PB: predicated region body
PF: predicated region fallthrough
CT: control target
= control target key end

     0   :  { %8 = vsyncpa [#allocation3], 0  ;;  %s578_s0 = inlined_call_operand.hbm [shape: f32[8,128], index: 0, kind: input, shape index: {}]   ;;  %s579_s1 = inlined_call_operand.hbm [shape: f32[2,128,128], index: 1, kind: input, shape index: {}]   ;;  %s580_s2 = inlined_call_operand.vmem [shape: f32[2,1,128], index: 2, kind: input, shape index: {}]   ;;  %s581_s3 = inlined_call_operand.hbm [shape: f32[8,128], index: 3, kind: output, shape index: {}]  }
   0x1   :  { %9 = vsyncpa [#allocation6], 0 }
   0x2   :  { %10 = vsyncpa [#allocation4], 0  ;;  %s485_s12 = smov [#allocation2]   ;;  %s486_s14 = smov [#allocation5]  }
   0x3   :  { %s17_s13 = sshll.u32 %s485_s12, 4  ;;  %s26_s15 = sshll.u32 %s486_s14, 4  ;;  %s18_s13 = int_to_ptr.vmem [resolvable:$true] %s17_s13  ;;  %s513_s15 = int_to_ptr.vmem [resolvable:$true] %s26_s15 }
   0x4   :  { %s413_s18 = scalar_lea.hbm %s578_s0, 128 }
   0x5   :  { %p414_p0 = scmp.ne.s32.totalorder %s578_s0, %s413_s18  ;;  %p417_p1 = scmp.lt.u32.totalorder %s413_s18, %s578_s0 }
   0x7   :  { %p419_p2 = pnand %p417_p1, %p414_p0 }
   0x9   :  { %422 = shalt.err (!%p419_p2)
}
   0xa   :  { %s423_s23 = scalar_lea.vmem %s18_s13, 128  ;;  %p428_p4 = scmp.lt.s32.totalorder %s18_s13, %s18_s13 }
   0xb   :  { %p424_p3 = scmp.ne.s32.totalorder %s18_s13, %s423_s23  ;;  %p429_p5 = scmp.lt.s32.totalorder %s423_s23, %s423_s23 }
   0xd   :  { %p430_p6 = por %p429_p5, %p428_p4 }
   0xf   :  { %p431_p7 = pnand %p430_p6, %p424_p3 }
  0x11   :  { %434 = shalt.err (!%p431_p7)
}
  0x12   :  { %20 = dma.hbm_to_vmem [thread:$0]  %s578_s0, 128, %s18_s13, [#allocation3]  }
  0x13   :  { %s435_s28 = scalar_lea.hbm %s579_s1, 4096 }
  0x14   :  { %p436_p8 = scmp.ne.s32.totalorder %s579_s1, %s435_s28  ;;  %p439_p9 = scmp.lt.u32.totalorder %s435_s28, %s579_s1 }
  0x16   :  { %p441_p10 = pnand %p439_p9, %p436_p8 }
  0x18   :  { %444 = shalt.err (!%p441_p10)
}
  0x19   :  { %s445_s6 = scalar_lea.vmem %s513_s15, 4096  ;;  %p450_p12 = scmp.lt.s32.totalorder %s513_s15, %s513_s15 }
  0x1a   :  { %p446_p11 = scmp.ne.s32.totalorder %s513_s15, %s445_s6  ;;  %p451_p13 = scmp.lt.s32.totalorder %s445_s6, %s445_s6 }
  0x1c   :  { %p452_p0 = por %p451_p13, %p450_p12 }
  0x1e   :  { %p453_p1 = pnand %p452_p0, %p446_p11 }
  0x20   :  { %456 = shalt.err (!%p453_p1)
}
  0x21   :  { %s487_s0 = smov 128   ;;  %s488_s7 = smov 8  }
  0x22   :  { %32 = dma.hbm_to_vmem [thread:$0]  %s579_s1, 4096, %s513_s15, [#allocation6], %s487_s0, %s487_s0, %s488_s7  }
  0x23   :  { %479 = dma.done.wait [#allocation3], 128  }
  0x24   :  { %480 = vsyncadd [#allocation3], 4294967168 }
  0x25   :  { %481 = dma.done.wait [#allocation6], 4096  }
  0x26   :  { %482 = vsyncadd [#allocation6], 4294963200  ;;  %v489_v0 = vmov 0.0|0.0   ;;  %vm490_vm0 = vmmov 0   ;;  %v491_v1 = vmov 0.0   ;;  %v42_v2 = vld [vmem:[#allocation5] sm:$0xff] }
  0x27   :  { %357 = vmatprep.subr.bf16.mxu0 %v489_v0  ;;  %319 = vmatprep.mubr.msk.f32.mxu0 %vm490_vm0, %v491_v1  ;;  %v43_v3 = vld [vmem:[#allocation5 + $0x8] sm:$0xff]  ;;  %v44_v4 = vld [vmem:[#allocation5 + $0x10] sm:$0xff]  ;;  %v45_v6 = vld [vmem:[#allocation5 + $0x18] sm:$0xff]  ;;  %s492_s13 = smov [#allocation7]  }
  0x28   :  { %381 = vmatprep.subr.bf16.mxu1 %v489_v0  ;;  %354 = vmatprep.mubr.msk.f32.mxu1 %vm490_vm0, %v491_v1  ;;  %v358_v5 = vpack.c.bf16 %v43_v3, %v42_v2  ;;  %v361_v7 = vpack.c.bf16 %v45_v6, %v44_v4  ;;  %v46_v8 = vld [vmem:[#allocation5 + $0x20] sm:$0xff]  ;;  %v47_v9 = vld [vmem:[#allocation5 + $0x28] sm:$0xff]  ;;  %v139_v12 = vld [vmem:[#allocation5 + $0x90] sm:$0xff]  ;;  %s240_s14 = sshll.u32 %s492_s13, 4  ;;  %s241_s14 = int_to_ptr.vmem [resolvable:$true] %s240_s14 }
  0x29   :  { %v137_v10 = vld [vmem:[#allocation5 + $0x80] sm:$0xff]  ;;  %v138_v11 = vld [vmem:[#allocation5 + $0x88] sm:$0xff]  ;;  %v140_v13 = vld [vmem:[#allocation5 + $0x98] sm:$0xff]  ;;  %v364_v14 = vpack.c.bf16 %v47_v9, %v46_v8  ;;  %s457_s15 = scalar_lea.vmem %s241_s14, 128  ;;  %p462_p3 = scmp.lt.s32.totalorder %s241_s14, %s241_s14 }
  0x2a   :  { %359 = vmatpush3.bf16.msra.mxu0 %v358_v5  ;;  %v382_v15 = vpack.c.bf16 %v138_v11, %v137_v10  ;;  %v48_v16 = vld [vmem:[#allocation5 + $0x30] sm:$0xff]  ;;  %v49_v17 = vld [vmem:[#allocation5 + $0x38] sm:$0xff]  ;;  %v385_v18 = vpack.c.bf16 %v140_v13, %v139_v12  ;;  %v141_v19 = vld [vmem:[#allocation5 + $0xa0] sm:$0xff]  ;;  %p458_p2 = scmp.ne.s32.totalorder %s241_s14, %s457_s15  ;;  %p463_p4 = scmp.lt.s32.totalorder %s457_s15, %s457_s15 }
  0x2b   :  { %360 = vmatprep.subr.bf16.mxu0 %v489_v0  ;;  %v142_v20 = vld [vmem:[#allocation5 + $0xa8] sm:$0xff]  ;;  %v367_v21 = vpack.c.bf16 %v49_v17, %v48_v16  ;;  %v50_v22 = vld [vmem:[#allocation5 + $0x40] sm:$0xff]  ;;  %v143_v25 = vld [vmem:[#allocation5 + $0xb0] sm:$0xff] }
  0x2c   :  { %383 = vmatpush3.bf16.msra.mxu1 %v382_v15  ;;  %v51_v23 = vld [vmem:[#allocation5 + $0x48] sm:$0xff]  ;;  %v388_v24 = vpack.c.bf16 %v142_v20, %v141_v19  ;;  %v144_v26 = vld [vmem:[#allocation5 + $0xb8] sm:$0xff]  ;;  %v52_v28 = vld [vmem:[#allocation5 + $0x50] sm:$0xff]  ;;  %p464_p5 = por %p463_p4, %p462_p3 }
  0x2d   :  { %384 = vmatprep.subr.bf16.mxu1 %v489_v0  ;;  %v370_v27 = vpack.c.bf16 %v51_v23, %v50_v22  ;;  %v53_v29 = vld [vmem:[#allocation5 + $0x58] sm:$0xff]  ;;  %v391_v30 = vpack.c.bf16 %v144_v26, %v143_v25  ;;  %v145_v31 = vld [vmem:[#allocation5 + $0xc0] sm:$0xff]  ;;  %v146_v32 = vld [vmem:[#allocation5 + $0xc8] sm:$0xff] }
  0x2e   :  { %362 = vmatpush3.bf16.msra.mxu0 %v361_v7  ;;  %v373_v33 = vpack.c.bf16 %v53_v29, %v52_v28  ;;  %v54_v34 = vld [vmem:[#allocation5 + $0x60] sm:$0xff]  ;;  %v55_v35 = vld [vmem:[#allocation5 + $0x68] sm:$0xff]  ;;  %v394_v36 = vpack.c.bf16 %v146_v32, %v145_v31  ;;  %v147_v37 = vld [vmem:[#allocation5 + $0xd0] sm:$0xff]  ;;  %p465_p6 = pnand %p464_p5, %p458_p2 }
  0x2f   :  { %363 = vmatprep.subr.bf16.mxu0 %v489_v0  ;;  %v148_v38 = vld [vmem:[#allocation5 + $0xd8] sm:$0xff]  ;;  %v376_v39 = vpack.c.bf16 %v55_v35, %v54_v34  ;;  %v56_v40 = vld [vmem:[#allocation5 + $0x70] sm:$0xff]  ;;  %v149_v43 = vld [vmem:[#allocation5 + $0xe0] sm:$0xff] }
  0x30   :  { %386 = vmatpush3.bf16.msra.mxu1 %v385_v18  ;;  %v57_v41 = vld [vmem:[#allocation5 + $0x78] sm:$0xff]  ;;  %v397_v42 = vpack.c.bf16 %v148_v38, %v147_v37  ;;  %v150_v44 = vld [vmem:[#allocation5 + $0xe8] sm:$0xff]  ;;  %v151_v48 = vld [vmem:[#allocation5 + $0xf0] sm:$0xff] }
  0x31   :  { %387 = vmatprep.subr.bf16.mxu1 %v489_v0  ;;  %v379_v45 = vpack.c.bf16 %v57_v41, %v56_v40  ;;  %v400_v46 = vpack.c.bf16 %v150_v44, %v149_v43  ;;  %v41_v47 = vld [vmem:[#allocation2] sm:$0xff] }
  0x32   :  { %365 = vmatpush3.bf16.msra.mxu0 %v364_v14  ;;  %v152_v49 = vld [vmem:[#allocation5 + $0xf8] sm:$0xff] }
  0x33   :  { %366 = vmatprep.subr.bf16.mxu0 %v489_v0  ;;  %v403_v50 = vpack.c.bf16 %v152_v49, %v151_v48  ;;  %v250_v51 = vld [vmem:[%s580_s2] ss:$0 sm:$0xff]  ;;  %v252_v56 = vld [vmem:[%s580_s2 + $0x1] ss:$0 sm:$0xff] }
  0x34   :  { %389 = vmatpush3.bf16.msra.mxu1 %v388_v24 }
  0x35   :  { %390 = vmatprep.subr.bf16.mxu1 %v489_v0 }
  0x36   :  { %368 = vmatpush3.bf16.msra.mxu0 %v367_v21 }
  0x37   :  { %369 = vmatprep.subr.bf16.mxu0 %v489_v0 }
  0x38   :  { %392 = vmatpush3.bf16.msra.mxu1 %v391_v30 }
  0x39   :  { %393 = vmatprep.subr.bf16.mxu1 %v489_v0 }
  0x3a   :  { %371 = vmatpush3.bf16.msra.mxu0 %v370_v27 }
  0x3b   :  { %372 = vmatprep.subr.bf16.mxu0 %v489_v0 }
  0x3c   :  { %395 = vmatpush3.bf16.msra.mxu1 %v394_v36 }
  0x3d   :  { %396 = vmatprep.subr.bf16.mxu1 %v489_v0 }
  0x3e   :  { %374 = vmatpush3.bf16.msra.mxu0 %v373_v33 }
  0x3f   :  { %375 = vmatprep.subr.bf16.mxu0 %v489_v0 }
  0x40   :  { %398 = vmatpush3.bf16.msra.mxu1 %v397_v42 }
  0x41   :  { %399 = vmatprep.subr.bf16.mxu1 %v489_v0 }
  0x42   :  { %377 = vmatpush3.bf16.msra.mxu0 %v376_v39 }
  0x43   :  { %378 = vmatprep.subr.bf16.mxu0 %v489_v0 }
  0x44   :  { %401 = vmatpush3.bf16.msra.mxu1 %v400_v46 }
  0x45   :  { %402 = vmatprep.subr.bf16.mxu1 %v489_v0 }
  0x46   :  { %380 = vmatpush3.bf16.msra.mxu0 %v379_v45 }
  0x48   :  { %404 = vmatpush3.bf16.msra.mxu1 %v403_v50 }
  0x49   :  { %320 = vmatmul.mubr.f32.vlgmr.msra.gmra.mrb[0].mxu0 %v41_v47 }
 0x11c   :  { %v131_v52 = vpop.f32.mrb[0].mxu0 }
 0x11d   :  { %v132_v53 = vadd.f32 %v250_v51, %v131_v52  ;;  %v321_v54 = vpop.f32.mrb[1].mxu0 }
 0x11f   :  { %v135_v55 = vmax.f32 %v132_v53, 0.0 }
 0x121   :  { %355 = vmatmul.mubr.f32.vlgmr.msra.gmra.mrb[0].mxu1 %v135_v55 }
 0x1f4   :  { %v227_v57 = vpop.f32.mrb[0].mxu1 }
 0x1f5   :  { %v228_v58 = vadd.f32 %v252_v56, %v227_v57  ;;  %v356_v59 = vpop.f32.mrb[1].mxu1 }
 0x1f7   :  { %v231_v60 = vadd.f32 %v228_v58, %v41_v47 }
 0x1f9   :  { %v232_v61 = vmax.f32 %v231_v60, 0.0 }
 0x1fb   :  { %233 = vst [vmem:[#allocation7] sm:$0xff] %v232_v61 }
 0x1fc   :  { %468 = shalt.err (!%p465_p6)
}
 0x1fd   :  { %s469_s2 = scalar_lea.hbm %s581_s3, 128 }
 0x1fe   :  { %p470_p7 = scmp.ne.s32.totalorder %s581_s3, %s469_s2  ;;  %p473_p8 = scmp.lt.u32.totalorder %s469_s2, %s581_s3 }
 0x200   :  { %p475_p9 = pnand %p473_p8, %p470_p7 }
 0x202   :  { %478 = shalt.err (!%p475_p9)
}
 0x203   :  { %243 = dma.vmem_to_hbm [thread:$0]  %s241_s14, 128, %s581_s3, [#allocation4]  }
 0x204   :  { %483 = dma.done.wait [#allocation4], 128  }
 0x205   :  { %484 = vsyncadd [#allocation4], 4294967168 }
 0x206   :  { %247 = vsyncpa [#allocation3], 1 }
 0x207   :  { %248 = vsyncpa [#allocation6], 1 }
 0x208   :  { %249 = vsyncpa [#allocation4], 1 }

</bundles_post_ra>
